<compile_context>
chip_gen: v5e
topology: v5e:2x2
jax: 0.10.0
libtpu: 0.0.40
codegen_flags: <defaults>
</compile_context>

<pallas_src>
import numpy as np
import jax
import jax.numpy as jnp
from jax.experimental import pallas as pl
from jax.experimental.pallas import tpu as pltpu


def _round_up(x, m):
    return ((x + m - 1) // m) * m


# -----------------------------------------------------------------------------
# Fused kernel: wavefront-scheduled stacked tanh-RNN + hoisted final Linear
# -----------------------------------------------------------------------------
def make_decoder_kernel(num_layers, t_max, b_p, h_p):
    def kernel(*refs):
        x_ref = refs[0]                               # (Tmax, Bp, Ep)      f32
        layer_refs = refs[1:1 + 2 * num_layers]       # per layer: (Fin_p+Hp, Hp) bf16, (1, Hp) f32
        wlin_ref = refs[1 + 2 * num_layers]           # (Hp, Vp)            bf16
        blin_ref = refs[2 + 2 * num_layers]           # (1,  Vp)            f32
        out_ref = refs[3 + 2 * num_layers]            # (Tmax*Bp, Vp)       f32

        zero_h = jnp.zeros((b_p, h_p), jnp.float32)
        # outs[l][t] = layer-l hidden state at time t (f32 traced values / vregs)
        outs = [[None] * t_max for _ in range(num_layers)]

        # Wavefront / staircase schedule over the (layer, time) grid.
        # Trace-time unrolled: Tmax is small and static, so every slice index is
        # static and the LLO scheduler sees the whole recurrence at once.
        for s in range(t_max + num_layers - 1):
            for l in range(num_layers):
                t = s - l
                if t < 0 or t >= t_max:
                    continue
                # Inputs come exclusively from stage s-1 -> matmuls within a
                # stage are independent and can overlap on the MXU.
                inp = x_ref[t] if l == 0 else outs[l - 1][t]      # (Bp, Fin_p) f32
                h_prev = outs[l][t - 1] if t > 0 else zero_h      # (Bp, Hp)    f32
                # Stacked weight: one MXU push of depth Fin_p+Hp per (layer, t).
                xh = jnp.concatenate([inp, h_prev], axis=-1).astype(jnp.bfloat16)
                pre = jnp.dot(xh, layer_refs[2 * l][...],
                              preferred_element_type=jnp.float32)
                outs[l][t] = jnp.tanh(pre + layer_refs[2 * l + 1][...])

        # Hoisted output Linear: one (Tmax*Bp, Hp) @ (Hp, Vp) matmul + a single
        # lane-dense slab store (the store happens off the recurrence path).
        h_top = jnp.concatenate(outs[num_layers - 1], axis=0).astype(jnp.bfloat16)
        logits = jnp.dot(h_top, wlin_ref[...], preferred_element_type=jnp.float32)
        out_ref[...] = (logits + blin_ref[...]).astype(out_ref.dtype)

    return kernel


# -----------------------------------------------------------------------------
# DecoderRNN forward (embedding gather / packing are thin XLA glue)
# -----------------------------------------------------------------------------
def decoder_forward(params, features, captions, lengths):
    """Matches DecoderRNN.forward: returns (sum(lengths), vocab_size)."""
    dims = params["dims"]
    E, H, V = dims["E"], dims["H"], dims["V"]
    E_p, H_p, V_p, L = dims["E_p"], dims["H_p"], dims["V_p"], dims["L"]

    lengths = [int(x) for x in lengths]
    assert lengths == sorted(lengths, reverse=True), "pack requires sorted lengths"

    B, T = captions.shape
    t_max = T + 1
    B_p = _round_up(B, 8)

    # Embedding lookup (gather) on the zero-padded table — glue.
    emb = params["embedding"][captions]                          # (B, T, E_p)
    feat_p = jnp.zeros((B, E_p), jnp.float32).at[:, :E].set(features)
    x = jnp.concatenate([feat_p[:, None, :], emb], axis=1)       # (B, T+1, E_p)
    x_tm = jnp.transpose(x, (1, 0, 2))                           # (Tmax, B, E_p)
    if B_p != B:
        x_tm = jnp.pad(x_tm, ((0, 0), (0, B_p - B), (0, 0)))     # (Tmax, Bp, E_p)

    kernel = make_decoder_kernel(L, t_max, B_p, H_p)

    in_specs = [pl.BlockSpec((t_max, B_p, E_p), lambda i: (0, 0, 0))]
    inputs = [x_tm]
    for layer in params["rnn"]:
        w, b = layer["w_stack"], layer["bias"]
        in_specs.append(pl.BlockSpec(w.shape, lambda i: (0, 0)))
        in_specs.append(pl.BlockSpec(b.shape, lambda i: (0, 0)))
        inputs.extend([w, b])
    in_specs.append(pl.BlockSpec(params["linear_w"].shape, lambda i: (0, 0)))
    in_specs.append(pl.BlockSpec(params["linear_b"].shape, lambda i: (0, 0)))
    inputs.extend([params["linear_w"], params["linear_b"]])

    logits_all = pl.pallas_call(
        kernel,
        out_shape=jax.ShapeDtypeStruct((t_max * B_p, V_p), jnp.float32),
        grid_spec=pltpu.PrefetchScalarGridSpec(
            num_scalar_prefetch=0,
            grid=(1,),
            in_specs=in_specs,
            out_specs=pl.BlockSpec((t_max * B_p, V_p), lambda i: (0, 0)),
        ),
        compiler_params=pltpu.CompilerParams(
            dimension_semantics=("arbitrary",),
            vmem_limit_bytes=32 * 1024 * 1024,
        ),
    )(*inputs)

    # pack_padded_sequence ordering: time-major, first batch_sizes[t] rows per t.
    # Row t*B_p + b of the lane-dense slab is (time t, batch b); b < B <= B_p.
    flat_idx = []
    for t in range(t_max):
        bs_t = sum(1 for Ln in lengths if Ln > t)
        flat_idx.extend(t * B_p + b for b in range(bs_t))
    flat_idx = jnp.asarray(flat_idx, dtype=jnp.int32)

    return jnp.take(logits_all, flat_idx, axis=0)[:, :V]         # (sum(lengths), V)


# -----------------------------------------------------------------------------
# Parameter init (shapes follow the PyTorch module); padded + reference copies.
# -----------------------------------------------------------------------------
def init_params(key, embedding_size, hidden_size, vocab_size, num_layers):
    E, H, V = embedding_size, hidden_size, vocab_size
    E_p, H_p, V_p = _round_up(E, 128), _round_up(H, 128), _round_up(V, 128)

    keys = jax.random.split(key, 3 + 4 * num_layers)
    ki = iter(keys)

    # nn.Embedding(vocab_size, embedding_size) — zero-pad feature columns.
    emb = jax.random.normal(next(ki), (V, E), jnp.float32)
    emb_p = jnp.zeros((V, E_p), jnp.float32).at[:, :E].set(emb)

    bound = 1.0 / np.sqrt(H)
    rnn_layers, ref_layers = [], []
    for layer in range(num_layers):
        fin = E if layer == 0 else H
        fin_p = E_p if layer == 0 else H_p
        w_ih = jax.random.uniform(next(ki), (H, fin), jnp.float32, -bound, bound)
        w_hh = jax.random.uniform(next(ki), (H, H), jnp.float32, -bound, bound)
        b_ih = jax.random.uniform(next(ki), (H,), jnp.float32, -bound, bound)
        b_hh = jax.random.uniform(next(ki), (H,), jnp.float32, -bound, bound)

        # Stacked, zero-padded weight: rows [0:fin) = W_ih^T, rows
        # [fin_p:fin_p+H) = W_hh^T.  Padded rows/cols and bias lanes are zero,
        # so padded hidden lanes stay tanh(0)=0 and never feed back.
        w_stack = jnp.zeros((fin_p + H_p, H_p), jnp.float32)
        w_stack = w_stack.at[:fin, :H].set(w_ih.T)
        w_stack = w_stack.at[fin_p:fin_p + H, :H].set(w_hh.T)
        bias = jnp.zeros((1, H_p), jnp.float32).at[0, :H].set(b_ih + b_hh)

        # MXU operands stored as bf16 (f32 accumulate inside the kernel).
        rnn_layers.append({"w_stack": w_stack.astype(jnp.bfloat16), "bias": bias})
        ref_layers.append({"w_ih_t": w_ih.T, "w_hh_t": w_hh.T,
                           "bias": (b_ih + b_hh)[None, :]})

    # nn.Linear(hidden_size, vocab_size)
    lb = 1.0 / np.sqrt(H)
    lw = jax.random.uniform(next(ki), (V, H), jnp.float32, -lb, lb)
    lbias = jax.random.uniform(next(ki), (V,), jnp.float32, -lb, lb)
    lw_p = jnp.zeros((H_p, V_p), jnp.float32).at[:H, :V].set(lw.T)
    lb_p = jnp.zeros((1, V_p), jnp.float32).at[0, :V].set(lbias)

    return {
        "dims": dict(E=E, H=H, V=V, E_p=E_p, H_p=H_p, V_p=V_p, L=num_layers),
        "embedding": emb_p,
        "rnn": rnn_layers,
        "linear_w": lw_p.astype(jnp.bfloat16),
        "linear_b": lb_p,
        "ref": {
            "embedding": emb,
            "rnn": ref_layers,
            "linear_w_t": lw.T,
            "linear_b": lbias[None, :],
        },
    }


# -----------------------------------------------------------------------------
# Pure-JAX f32 reference (mirrors torch packed-RNN semantics) for verification
# -----------------------------------------------------------------------------
def reference_forward(ref, features, captions, lengths):
    emb = ref["embedding"][captions]
    x = jnp.concatenate([features[:, None, :], emb], axis=1)     # (B, Tmax, E)
    B, Tmax, _ = x.shape
    h_seq = jnp.transpose(x, (1, 0, 2))
    for layer in ref["rnn"]:
        H = layer["w_hh_t"].shape[0]
        h = jnp.zeros((B, H), jnp.float32)
        outs = []
        for t in range(Tmax):
            h = jnp.tanh(h_seq[t] @ layer["w_ih_t"] + h @ layer["w_hh_t"]
                         + layer["bias"])
            outs.append(h)
        h_seq = jnp.stack(outs, axis=0)
    packed = []
    for t in range(Tmax):
        bs_t = sum(1 for L in lengths if L > t)
        for b in range(bs_t):
            packed.append(h_seq[t, b])
    packed = jnp.stack(packed, axis=0)
    return packed @ ref["linear_w_t"] + ref["linear_b"]


# -----------------------------------------------------------------------------
if __name__ == "__main__":
    embedding_size = 32
    hidden_size = 32
    vocab_size = 40
    num_layers = 2
    batch = 4
    cap_len = 7                      # captions length T; sequence length = T+1 = 8
    lengths = [8, 6, 5, 3]           # sorted descending, as pack_padded_sequence requires

    key = jax.random.PRNGKey(0)
    k_params, k_feat, k_cap = jax.random.split(key, 3)

    params = init_params(k_params, embedding_size, hidden_size, vocab_size,
                         num_layers)
    features = jax.random.normal(k_feat, (batch, embedding_size), jnp.float32)
    captions = jax.random.randint(k_cap, (batch, cap_len), 0, vocab_size,
                                  dtype=jnp.int32)

    out = decoder_forward(params, features, captions, lengths)
    out = jax.block_until_ready(out)

    ref = reference_forward(params["ref"], features, captions, lengths)
    assert out.shape == (sum(lengths), vocab_size), out.shape
    # bf16 MXU operands vs f32 reference -> loosened tolerance per perf review.
    np.testing.assert_allclose(np.asarray(out), np.asarray(ref),
                               rtol=3e-2, atol=3e-2)

    print("KERNEL_OK")
</pallas_src>

<mosaic_0001>
module attributes {stable_mosaic.version = 11 : i64} {
  func.func @kernel(%arg0: i32, %arg1: memref<8x8x128xf32, #tpu.memory_space<vmem>>, %arg2: memref<256x128xbf16, #tpu.memory_space<vmem>>, %arg3: memref<1x128xf32, #tpu.memory_space<vmem>>, %arg4: memref<256x128xbf16, #tpu.memory_space<vmem>>, %arg5: memref<1x128xf32, #tpu.memory_space<vmem>>, %arg6: memref<128x128xbf16, #tpu.memory_space<vmem>>, %arg7: memref<1x128xf32, #tpu.memory_space<vmem>>, %arg8: memref<64x128xf32, #tpu.memory_space<vmem>>) attributes {dimension_semantics = [#tpu.dimension_semantics<arbitrary>], iteration_bounds = array<i64: 1>, scalar_prefetch = 0 : i64, scratch_operands = 0 : i64, tpu.core_type = #tpu.core_type<tc>, window_params = [{pipeline_mode = #tpu.pipeline_mode<synchronous>, transform_indices = @transform_0, window_bounds = array<i64: 8, 8, 128>}, {pipeline_mode = #tpu.pipeline_mode<synchronous>, transform_indices = @transform_1, window_bounds = array<i64: 256, 128>}, {pipeline_mode = #tpu.pipeline_mode<synchronous>, transform_indices = @transform_2, window_bounds = array<i64: 1, 128>}, {pipeline_mode = #tpu.pipeline_mode<synchronous>, transform_indices = @transform_3, window_bounds = array<i64: 256, 128>}, {pipeline_mode = #tpu.pipeline_mode<synchronous>, transform_indices = @transform_4, window_bounds = array<i64: 1, 128>}, {pipeline_mode = #tpu.pipeline_mode<synchronous>, transform_indices = @transform_5, window_bounds = array<i64: 128, 128>}, {pipeline_mode = #tpu.pipeline_mode<synchronous>, transform_indices = @transform_6, window_bounds = array<i64: 1, 128>}, {pipeline_mode = #tpu.pipeline_mode<synchronous>, transform_indices = @transform_7, window_bounds = array<i64: 64, 128>}]} {
    %cst = arith.constant 0.000000e+00 : f32
    %0 = vector.broadcast %cst : f32 to vector<8x128xf32>
    %c0 = arith.constant 0 : index
    %c0_0 = arith.constant 0 : index
    %c0_1 = arith.constant 0 : index
    %1 = vector.load %arg1[%c0, %c0_0, %c0_1] : memref<8x8x128xf32, #tpu.memory_space<vmem>>, vector<1x8x128xf32>
    %2 = vector.shape_cast %1 : vector<1x8x128xf32> to vector<8x128xf32>
    %3 = tpu.concatenate %2, %0 in 1 : vector<8x128xf32>, vector<8x128xf32> -> vector<8x256xf32>
    %4 = arith.truncf %3 : vector<8x256xf32> to vector<8x256xbf16>
    %c0_2 = arith.constant 0 : index
    %c0_3 = arith.constant 0 : index
    %5 = vector.load %arg2[%c0_2, %c0_3] : memref<256x128xbf16, #tpu.memory_space<vmem>>, vector<256x128xbf16>
    %cst_4 = arith.constant dense<0.000000e+00> : vector<8x128xf32>
    %6 = tpu.matmul %4, %5, %cst_4 {dimension_numbers = #tpu.dot_dimension_numbers<[1], [0], [0], [1], [0, 0, 1, 1], [], []>} : vector<8x256xbf16>, vector<256x128xbf16>, vector<8x128xf32> -> vector<8x128xf32>
    %c0_5 = arith.constant 0 : index
    %c0_6 = arith.constant 0 : index
    %7 = vector.load %arg3[%c0_5, %c0_6] : memref<1x128xf32, #tpu.memory_space<vmem>>, vector<1x128xf32>
    %8 = vector.broadcast %7 : vector<1x128xf32> to vector<8x128xf32>
    %9 = arith.addf %6, %8 : vector<8x128xf32>
    %10 = math.tanh %9 : vector<8x128xf32>
    %c1 = arith.constant 1 : index
    %c0_7 = arith.constant 0 : index
    %c0_8 = arith.constant 0 : index
    %11 = vector.load %arg1[%c1, %c0_7, %c0_8] : memref<8x8x128xf32, #tpu.memory_space<vmem>>, vector<1x8x128xf32>
    %12 = vector.shape_cast %11 : vector<1x8x128xf32> to vector<8x128xf32>
    %13 = tpu.concatenate %12, %10 in 1 : vector<8x128xf32>, vector<8x128xf32> -> vector<8x256xf32>
    %14 = arith.truncf %13 : vector<8x256xf32> to vector<8x256xbf16>
    %c0_9 = arith.constant 0 : index
    %c0_10 = arith.constant 0 : index
    %15 = vector.load %arg2[%c0_9, %c0_10] : memref<256x128xbf16, #tpu.memory_space<vmem>>, vector<256x128xbf16>
    %cst_11 = arith.constant dense<0.000000e+00> : vector<8x128xf32>
    %16 = tpu.matmul %14, %15, %cst_11 {dimension_numbers = #tpu.dot_dimension_numbers<[1], [0], [0], [1], [0, 0, 1, 1], [], []>} : vector<8x256xbf16>, vector<256x128xbf16>, vector<8x128xf32> -> vector<8x128xf32>
    %c0_12 = arith.constant 0 : index
    %c0_13 = arith.constant 0 : index
    %17 = vector.load %arg3[%c0_12, %c0_13] : memref<1x128xf32, #tpu.memory_space<vmem>>, vector<1x128xf32>
    %18 = vector.broadcast %17 : vector<1x128xf32> to vector<8x128xf32>
    %19 = arith.addf %16, %18 : vector<8x128xf32>
    %20 = math.tanh %19 : vector<8x128xf32>
    %21 = tpu.concatenate %10, %0 in 1 : vector<8x128xf32>, vector<8x128xf32> -> vector<8x256xf32>
    %22 = arith.truncf %21 : vector<8x256xf32> to vector<8x256xbf16>
    %c0_14 = arith.constant 0 : index
    %c0_15 = arith.constant 0 : index
    %23 = vector.load %arg4[%c0_14, %c0_15] : memref<256x128xbf16, #tpu.memory_space<vmem>>, vector<256x128xbf16>
    %cst_16 = arith.constant dense<0.000000e+00> : vector<8x128xf32>
    %24 = tpu.matmul %22, %23, %cst_16 {dimension_numbers = #tpu.dot_dimension_numbers<[1], [0], [0], [1], [0, 0, 1, 1], [], []>} : vector<8x256xbf16>, vector<256x128xbf16>, vector<8x128xf32> -> vector<8x128xf32>
    %c0_17 = arith.constant 0 : index
    %c0_18 = arith.constant 0 : index
    %25 = vector.load %arg5[%c0_17, %c0_18] : memref<1x128xf32, #tpu.memory_space<vmem>>, vector<1x128xf32>
    %26 = vector.broadcast %25 : vector<1x128xf32> to vector<8x128xf32>
    %27 = arith.addf %24, %26 : vector<8x128xf32>
    %28 = math.tanh %27 : vector<8x128xf32>
    %c2 = arith.constant 2 : index
    %c0_19 = arith.constant 0 : index
    %c0_20 = arith.constant 0 : index
    %29 = vector.load %arg1[%c2, %c0_19, %c0_20] : memref<8x8x128xf32, #tpu.memory_space<vmem>>, vector<1x8x128xf32>
    %30 = vector.shape_cast %29 : vector<1x8x128xf32> to vector<8x128xf32>
    %31 = tpu.concatenate %30, %20 in 1 : vector<8x128xf32>, vector<8x128xf32> -> vector<8x256xf32>
    %32 = arith.truncf %31 : vector<8x256xf32> to vector<8x256xbf16>
    %c0_21 = arith.constant 0 : index
    %c0_22 = arith.constant 0 : index
    %33 = vector.load %arg2[%c0_21, %c0_22] : memref<256x128xbf16, #tpu.memory_space<vmem>>, vector<256x128xbf16>
    %cst_23 = arith.constant dense<0.000000e+00> : vector<8x128xf32>
    %34 = tpu.matmul %32, %33, %cst_23 {dimension_numbers = #tpu.dot_dimension_numbers<[1], [0], [0], [1], [0, 0, 1, 1], [], []>} : vector<8x256xbf16>, vector<256x128xbf16>, vector<8x128xf32> -> vector<8x128xf32>
    %c0_24 = arith.constant 0 : index
    %c0_25 = arith.constant 0 : index
    %35 = vector.load %arg3[%c0_24, %c0_25] : memref<1x128xf32, #tpu.memory_space<vmem>>, vector<1x128xf32>
    %36 = vector.broadcast %35 : vector<1x128xf32> to vector<8x128xf32>
    %37 = arith.addf %34, %36 : vector<8x128xf32>
    %38 = math.tanh %37 : vector<8x128xf32>
    %39 = tpu.concatenate %20, %28 in 1 : vector<8x128xf32>, vector<8x128xf32> -> vector<8x256xf32>
    %40 = arith.truncf %39 : vector<8x256xf32> to vector<8x256xbf16>
    %c0_26 = arith.constant 0 : index
    %c0_27 = arith.constant 0 : index
    %41 = vector.load %arg4[%c0_26, %c0_27] : memref<256x128xbf16, #tpu.memory_space<vmem>>, vector<256x128xbf16>
    %cst_28 = arith.constant dense<0.000000e+00> : vector<8x128xf32>
    %42 = tpu.matmul %40, %41, %cst_28 {dimension_numbers = #tpu.dot_dimension_numbers<[1], [0], [0], [1], [0, 0, 1, 1], [], []>} : vector<8x256xbf16>, vector<256x128xbf16>, vector<8x128xf32> -> vector<8x128xf32>
    %c0_29 = arith.constant 0 : index
    %c0_30 = arith.constant 0 : index
    %43 = vector.load %arg5[%c0_29, %c0_30] : memref<1x128xf32, #tpu.memory_space<vmem>>, vector<1x128xf32>
    %44 = vector.broadcast %43 : vector<1x128xf32> to vector<8x128xf32>
    %45 = arith.addf %42, %44 : vector<8x128xf32>
    %46 = math.tanh %45 : vector<8x128xf32>
    %c3 = arith.constant 3 : index
    %c0_31 = arith.constant 0 : index
    %c0_32 = arith.constant 0 : index
    %47 = vector.load %arg1[%c3, %c0_31, %c0_32] : memref<8x8x128xf32, #tpu.memory_space<vmem>>, vector<1x8x128xf32>
    %48 = vector.shape_cast %47 : vector<1x8x128xf32> to vector<8x128xf32>
    %49 = tpu.concatenate %48, %38 in 1 : vector<8x128xf32>, vector<8x128xf32> -> vector<8x256xf32>
    %50 = arith.truncf %49 : vector<8x256xf32> to vector<8x256xbf16>
    %c0_33 = arith.constant 0 : index
    %c0_34 = arith.constant 0 : index
    %51 = vector.load %arg2[%c0_33, %c0_34] : memref<256x128xbf16, #tpu.memory_space<vmem>>, vector<256x128xbf16>
    %cst_35 = arith.constant dense<0.000000e+00> : vector<8x128xf32>
    %52 = tpu.matmul %50, %51, %cst_35 {dimension_numbers = #tpu.dot_dimension_numbers<[1], [0], [0], [1], [0, 0, 1, 1], [], []>} : vector<8x256xbf16>, vector<256x128xbf16>, vector<8x128xf32> -> vector<8x128xf32>
    %c0_36 = arith.constant 0 : index
    %c0_37 = arith.constant 0 : index
    %53 = vector.load %arg3[%c0_36, %c0_37] : memref<1x128xf32, #tpu.memory_space<vmem>>, vector<1x128xf32>
    %54 = vector.broadcast %53 : vector<1x128xf32> to vector<8x128xf32>
    %55 = arith.addf %52, %54 : vector<8x128xf32>
    %56 = math.tanh %55 : vector<8x128xf32>
    %57 = tpu.concatenate %38, %46 in 1 : vector<8x128xf32>, vector<8x128xf32> -> vector<8x256xf32>
    %58 = arith.truncf %57 : vector<8x256xf32> to vector<8x256xbf16>
    %c0_38 = arith.constant 0 : index
    %c0_39 = arith.constant 0 : index
    %59 = vector.load %arg4[%c0_38, %c0_39] : memref<256x128xbf16, #tpu.memory_space<vmem>>, vector<256x128xbf16>
    %cst_40 = arith.constant dense<0.000000e+00> : vector<8x128xf32>
    %60 = tpu.matmul %58, %59, %cst_40 {dimension_numbers = #tpu.dot_dimension_numbers<[1], [0], [0], [1], [0, 0, 1, 1], [], []>} : vector<8x256xbf16>, vector<256x128xbf16>, vector<8x128xf32> -> vector<8x128xf32>
    %c0_41 = arith.constant 0 : index
    %c0_42 = arith.constant 0 : index
    %61 = vector.load %arg5[%c0_41, %c0_42] : memref<1x128xf32, #tpu.memory_space<vmem>>, vector<1x128xf32>
    %62 = vector.broadcast %61 : vector<1x128xf32> to vector<8x128xf32>
    %63 = arith.addf %60, %62 : vector<8x128xf32>
    %64 = math.tanh %63 : vector<8x128xf32>
    %c4 = arith.constant 4 : index
    %c0_43 = arith.constant 0 : index
    %c0_44 = arith.constant 0 : index
    %65 = vector.load %arg1[%c4, %c0_43, %c0_44] : memref<8x8x128xf32, #tpu.memory_space<vmem>>, vector<1x8x128xf32>
    %66 = vector.shape_cast %65 : vector<1x8x128xf32> to vector<8x128xf32>
    %67 = tpu.concatenate %66, %56 in 1 : vector<8x128xf32>, vector<8x128xf32> -> vector<8x256xf32>
    %68 = arith.truncf %67 : vector<8x256xf32> to vector<8x256xbf16>
    %c0_45 = arith.constant 0 : index
    %c0_46 = arith.constant 0 : index
    %69 = vector.load %arg2[%c0_45, %c0_46] : memref<256x128xbf16, #tpu.memory_space<vmem>>, vector<256x128xbf16>
    %cst_47 = arith.constant dense<0.000000e+00> : vector<8x128xf32>
    %70 = tpu.matmul %68, %69, %cst_47 {dimension_numbers = #tpu.dot_dimension_numbers<[1], [0], [0], [1], [0, 0, 1, 1], [], []>} : vector<8x256xbf16>, vector<256x128xbf16>, vector<8x128xf32> -> vector<8x128xf32>
    %c0_48 = arith.constant 0 : index
    %c0_49 = arith.constant 0 : index
    %71 = vector.load %arg3[%c0_48, %c0_49] : memref<1x128xf32, #tpu.memory_space<vmem>>, vector<1x128xf32>
    %72 = vector.broadcast %71 : vector<1x128xf32> to vector<8x128xf32>
    %73 = arith.addf %70, %72 : vector<8x128xf32>
    %74 = math.tanh %73 : vector<8x128xf32>
    %75 = tpu.concatenate %56, %64 in 1 : vector<8x128xf32>, vector<8x128xf32> -> vector<8x256xf32>
    %76 = arith.truncf %75 : vector<8x256xf32> to vector<8x256xbf16>
    %c0_50 = arith.constant 0 : index
    %c0_51 = arith.constant 0 : index
    %77 = vector.load %arg4[%c0_50, %c0_51] : memref<256x128xbf16, #tpu.memory_space<vmem>>, vector<256x128xbf16>
    %cst_52 = arith.constant dense<0.000000e+00> : vector<8x128xf32>
    %78 = tpu.matmul %76, %77, %cst_52 {dimension_numbers = #tpu.dot_dimension_numbers<[1], [0], [0], [1], [0, 0, 1, 1], [], []>} : vector<8x256xbf16>, vector<256x128xbf16>, vector<8x128xf32> -> vector<8x128xf32>
    %c0_53 = arith.constant 0 : index
    %c0_54 = arith.constant 0 : index
    %79 = vector.load %arg5[%c0_53, %c0_54] : memref<1x128xf32, #tpu.memory_space<vmem>>, vector<1x128xf32>
    %80 = vector.broadcast %79 : vector<1x128xf32> to vector<8x128xf32>
    %81 = arith.addf %78, %80 : vector<8x128xf32>
    %82 = math.tanh %81 : vector<8x128xf32>
    %c5 = arith.constant 5 : index
    %c0_55 = arith.constant 0 : index
    %c0_56 = arith.constant 0 : index
    %83 = vector.load %arg1[%c5, %c0_55, %c0_56] : memref<8x8x128xf32, #tpu.memory_space<vmem>>, vector<1x8x128xf32>
    %84 = vector.shape_cast %83 : vector<1x8x128xf32> to vector<8x128xf32>
    %85 = tpu.concatenate %84, %74 in 1 : vector<8x128xf32>, vector<8x128xf32> -> vector<8x256xf32>
    %86 = arith.truncf %85 : vector<8x256xf32> to vector<8x256xbf16>
    %c0_57 = arith.constant 0 : index
    %c0_58 = arith.constant 0 : index
    %87 = vector.load %arg2[%c0_57, %c0_58] : memref<256x128xbf16, #tpu.memory_space<vmem>>, vector<256x128xbf16>
    %cst_59 = arith.constant dense<0.000000e+00> : vector<8x128xf32>
    %88 = tpu.matmul %86, %87, %cst_59 {dimension_numbers = #tpu.dot_dimension_numbers<[1], [0], [0], [1], [0, 0, 1, 1], [], []>} : vector<8x256xbf16>, vector<256x128xbf16>, vector<8x128xf32> -> vector<8x128xf32>
    %c0_60 = arith.constant 0 : index
    %c0_61 = arith.constant 0 : index
    %89 = vector.load %arg3[%c0_60, %c0_61] : memref<1x128xf32, #tpu.memory_space<vmem>>, vector<1x128xf32>
    %90 = vector.broadcast %89 : vector<1x128xf32> to vector<8x128xf32>
    %91 = arith.addf %88, %90 : vector<8x128xf32>
    %92 = math.tanh %91 : vector<8x128xf32>
    %93 = tpu.concatenate %74, %82 in 1 : vector<8x128xf32>, vector<8x128xf32> -> vector<8x256xf32>
    %94 = arith.truncf %93 : vector<8x256xf32> to vector<8x256xbf16>
    %c0_62 = arith.constant 0 : index
    %c0_63 = arith.constant 0 : index
    %95 = vector.load %arg4[%c0_62, %c0_63] : memref<256x128xbf16, #tpu.memory_space<vmem>>, vector<256x128xbf16>
    %cst_64 = arith.constant dense<0.000000e+00> : vector<8x128xf32>
    %96 = tpu.matmul %94, %95, %cst_64 {dimension_numbers = #tpu.dot_dimension_numbers<[1], [0], [0], [1], [0, 0, 1, 1], [], []>} : vector<8x256xbf16>, vector<256x128xbf16>, vector<8x128xf32> -> vector<8x128xf32>
    %c0_65 = arith.constant 0 : index
    %c0_66 = arith.constant 0 : index
    %97 = vector.load %arg5[%c0_65, %c0_66] : memref<1x128xf32, #tpu.memory_space<vmem>>, vector<1x128xf32>
    %98 = vector.broadcast %97 : vector<1x128xf32> to vector<8x128xf32>
    %99 = arith.addf %96, %98 : vector<8x128xf32>
    %100 = math.tanh %99 : vector<8x128xf32>
    %c6 = arith.constant 6 : index
    %c0_67 = arith.constant 0 : index
    %c0_68 = arith.constant 0 : index
    %101 = vector.load %arg1[%c6, %c0_67, %c0_68] : memref<8x8x128xf32, #tpu.memory_space<vmem>>, vector<1x8x128xf32>
    %102 = vector.shape_cast %101 : vector<1x8x128xf32> to vector<8x128xf32>
    %103 = tpu.concatenate %102, %92 in 1 : vector<8x128xf32>, vector<8x128xf32> -> vector<8x256xf32>
    %104 = arith.truncf %103 : vector<8x256xf32> to vector<8x256xbf16>
    %c0_69 = arith.constant 0 : index
    %c0_70 = arith.constant 0 : index
    %105 = vector.load %arg2[%c0_69, %c0_70] : memref<256x128xbf16, #tpu.memory_space<vmem>>, vector<256x128xbf16>
    %cst_71 = arith.constant dense<0.000000e+00> : vector<8x128xf32>
    %106 = tpu.matmul %104, %105, %cst_71 {dimension_numbers = #tpu.dot_dimension_numbers<[1], [0], [0], [1], [0, 0, 1, 1], [], []>} : vector<8x256xbf16>, vector<256x128xbf16>, vector<8x128xf32> -> vector<8x128xf32>
    %c0_72 = arith.constant 0 : index
    %c0_73 = arith.constant 0 : index
    %107 = vector.load %arg3[%c0_72, %c0_73] : memref<1x128xf32, #tpu.memory_space<vmem>>, vector<1x128xf32>
    %108 = vector.broadcast %107 : vector<1x128xf32> to vector<8x128xf32>
    %109 = arith.addf %106, %108 : vector<8x128xf32>
    %110 = math.tanh %109 : vector<8x128xf32>
    %111 = tpu.concatenate %92, %100 in 1 : vector<8x128xf32>, vector<8x128xf32> -> vector<8x256xf32>
    %112 = arith.truncf %111 : vector<8x256xf32> to vector<8x256xbf16>
    %c0_74 = arith.constant 0 : index
    %c0_75 = arith.constant 0 : index
    %113 = vector.load %arg4[%c0_74, %c0_75] : memref<256x128xbf16, #tpu.memory_space<vmem>>, vector<256x128xbf16>
    %cst_76 = arith.constant dense<0.000000e+00> : vector<8x128xf32>
    %114 = tpu.matmul %112, %113, %cst_76 {dimension_numbers = #tpu.dot_dimension_numbers<[1], [0], [0], [1], [0, 0, 1, 1], [], []>} : vector<8x256xbf16>, vector<256x128xbf16>, vector<8x128xf32> -> vector<8x128xf32>
    %c0_77 = arith.constant 0 : index
    %c0_78 = arith.constant 0 : index
    %115 = vector.load %arg5[%c0_77, %c0_78] : memref<1x128xf32, #tpu.memory_space<vmem>>, vector<1x128xf32>
    %116 = vector.broadcast %115 : vector<1x128xf32> to vector<8x128xf32>
    %117 = arith.addf %114, %116 : vector<8x128xf32>
    %118 = math.tanh %117 : vector<8x128xf32>
    %c7 = arith.constant 7 : index
    %c0_79 = arith.constant 0 : index
    %c0_80 = arith.constant 0 : index
    %119 = vector.load %arg1[%c7, %c0_79, %c0_80] : memref<8x8x128xf32, #tpu.memory_space<vmem>>, vector<1x8x128xf32>
    %120 = vector.shape_cast %119 : vector<1x8x128xf32> to vector<8x128xf32>
    %121 = tpu.concatenate %120, %110 in 1 : vector<8x128xf32>, vector<8x128xf32> -> vector<8x256xf32>
    %122 = arith.truncf %121 : vector<8x256xf32> to vector<8x256xbf16>
    %c0_81 = arith.constant 0 : index
    %c0_82 = arith.constant 0 : index
    %123 = vector.load %arg2[%c0_81, %c0_82] : memref<256x128xbf16, #tpu.memory_space<vmem>>, vector<256x128xbf16>
    %cst_83 = arith.constant dense<0.000000e+00> : vector<8x128xf32>
    %124 = tpu.matmul %122, %123, %cst_83 {dimension_numbers = #tpu.dot_dimension_numbers<[1], [0], [0], [1], [0, 0, 1, 1], [], []>} : vector<8x256xbf16>, vector<256x128xbf16>, vector<8x128xf32> -> vector<8x128xf32>
    %c0_84 = arith.constant 0 : index
    %c0_85 = arith.constant 0 : index
    %125 = vector.load %arg3[%c0_84, %c0_85] : memref<1x128xf32, #tpu.memory_space<vmem>>, vector<1x128xf32>
    %126 = vector.broadcast %125 : vector<1x128xf32> to vector<8x128xf32>
    %127 = arith.addf %124, %126 : vector<8x128xf32>
    %128 = math.tanh %127 : vector<8x128xf32>
    %129 = tpu.concatenate %110, %118 in 1 : vector<8x128xf32>, vector<8x128xf32> -> vector<8x256xf32>
    %130 = arith.truncf %129 : vector<8x256xf32> to vector<8x256xbf16>
    %c0_86 = arith.constant 0 : index
    %c0_87 = arith.constant 0 : index
    %131 = vector.load %arg4[%c0_86, %c0_87] : memref<256x128xbf16, #tpu.memory_space<vmem>>, vector<256x128xbf16>
    %cst_88 = arith.constant dense<0.000000e+00> : vector<8x128xf32>
    %132 = tpu.matmul %130, %131, %cst_88 {dimension_numbers = #tpu.dot_dimension_numbers<[1], [0], [0], [1], [0, 0, 1, 1], [], []>} : vector<8x256xbf16>, vector<256x128xbf16>, vector<8x128xf32> -> vector<8x128xf32>
    %c0_89 = arith.constant 0 : index
    %c0_90 = arith.constant 0 : index
    %133 = vector.load %arg5[%c0_89, %c0_90] : memref<1x128xf32, #tpu.memory_space<vmem>>, vector<1x128xf32>
    %134 = vector.broadcast %133 : vector<1x128xf32> to vector<8x128xf32>
    %135 = arith.addf %132, %134 : vector<8x128xf32>
    %136 = math.tanh %135 : vector<8x128xf32>
    %137 = tpu.concatenate %128, %136 in 1 : vector<8x128xf32>, vector<8x128xf32> -> vector<8x256xf32>
    %138 = arith.truncf %137 : vector<8x256xf32> to vector<8x256xbf16>
    %c0_91 = arith.constant 0 : index
    %c0_92 = arith.constant 0 : index
    %139 = vector.load %arg4[%c0_91, %c0_92] : memref<256x128xbf16, #tpu.memory_space<vmem>>, vector<256x128xbf16>
    %cst_93 = arith.constant dense<0.000000e+00> : vector<8x128xf32>
    %140 = tpu.matmul %138, %139, %cst_93 {dimension_numbers = #tpu.dot_dimension_numbers<[1], [0], [0], [1], [0, 0, 1, 1], [], []>} : vector<8x256xbf16>, vector<256x128xbf16>, vector<8x128xf32> -> vector<8x128xf32>
    %c0_94 = arith.constant 0 : index
    %c0_95 = arith.constant 0 : index
    %141 = vector.load %arg5[%c0_94, %c0_95] : memref<1x128xf32, #tpu.memory_space<vmem>>, vector<1x128xf32>
    %142 = vector.broadcast %141 : vector<1x128xf32> to vector<8x128xf32>
    %143 = arith.addf %140, %142 : vector<8x128xf32>
    %144 = math.tanh %143 : vector<8x128xf32>
    %145 = tpu.concatenate %28, %46, %64, %82, %100, %118, %136, %144 in 0 : vector<8x128xf32>, vector<8x128xf32>, vector<8x128xf32>, vector<8x128xf32>, vector<8x128xf32>, vector<8x128xf32>, vector<8x128xf32>, vector<8x128xf32> -> vector<64x128xf32>
    %146 = arith.truncf %145 : vector<64x128xf32> to vector<64x128xbf16>
    %c0_96 = arith.constant 0 : index
    %c0_97 = arith.constant 0 : index
    %147 = vector.load %arg6[%c0_96, %c0_97] : memref<128x128xbf16, #tpu.memory_space<vmem>>, vector<128x128xbf16>
    %cst_98 = arith.constant dense<0.000000e+00> : vector<64x128xf32>
    %148 = tpu.matmul %146, %147, %cst_98 {dimension_numbers = #tpu.dot_dimension_numbers<[1], [0], [0], [1], [0, 0, 1, 1], [], []>} : vector<64x128xbf16>, vector<128x128xbf16>, vector<64x128xf32> -> vector<64x128xf32>
    %c0_99 = arith.constant 0 : index
    %c0_100 = arith.constant 0 : index
    %149 = vector.load %arg7[%c0_99, %c0_100] : memref<1x128xf32, #tpu.memory_space<vmem>>, vector<1x128xf32>
    %150 = vector.broadcast %149 : vector<1x128xf32> to vector<64x128xf32>
    %151 = arith.addf %148, %150 : vector<64x128xf32>
    %c0_101 = arith.constant 0 : index
    %c0_102 = arith.constant 0 : index
    %152 = vector.load %arg8[%c0_101, %c0_102] : memref<64x128xf32, #tpu.memory_space<vmem>>, vector<64x128xf32>
    tpu.vector_store %arg8[%c0_101, %c0_102], %151 {strides = array<i32>} : memref<64x128xf32, #tpu.memory_space<vmem>>, vector<64x128xf32>,
    return
  }
  func.func @transform_0(%arg0: i32) -> (i32, i32, i32) {
    %c0_i32 = arith.constant 0 : i32
    %c0_i32_0 = arith.constant 0 : i32
    %c0_i32_1 = arith.constant 0 : i32
    %c0_i32_2 = arith.constant 0 : i32
    return %c0_i32, %c0_i32_0, %c0_i32_1 : i32, i32, i32
  }
  func.func @transform_1(%arg0: i32) -> (i32, i32) {
    %c0_i32 = arith.constant 0 : i32
    %c0_i32_0 = arith.constant 0 : i32
    %c0_i32_1 = arith.constant 0 : i32
    return %c0_i32, %c0_i32_0 : i32, i32
  }
  func.func @transform_2(%arg0: i32) -> (i32, i32) {
    %c0_i32 = arith.constant 0 : i32
    %c0_i32_0 = arith.constant 0 : i32
    %c0_i32_1 = arith.constant 0 : i32
    return %c0_i32, %c0_i32_0 : i32, i32
  }
  func.func @transform_3(%arg0: i32) -> (i32, i32) {
    %c0_i32 = arith.constant 0 : i32
    %c0_i32_0 = arith.constant 0 : i32
    %c0_i32_1 = arith.constant 0 : i32
    return %c0_i32, %c0_i32_0 : i32, i32
  }
  func.func @transform_4(%arg0: i32) -> (i32, i32) {
    %c0_i32 = arith.constant 0 : i32
    %c0_i32_0 = arith.constant 0 : i32
    %c0_i32_1 = arith.constant 0 : i32
    return %c0_i32, %c0_i32_0 : i32, i32
  }
  func.func @transform_5(%arg0: i32) -> (i32, i32) {
    %c0_i32 = arith.constant 0 : i32
    %c0_i32_0 = arith.constant 0 : i32
    %c0_i32_1 = arith.constant 0 : i32
    return %c0_i32, %c0_i32_0 : i32, i32
  }
  func.func @transform_6(%arg0: i32) -> (i32, i32) {
    %c0_i32 = arith.constant 0 : i32
    %c0_i32_0 = arith.constant 0 : i32
    %c0_i32_1 = arith.constant 0 : i32
    return %c0_i32, %c0_i32_0 : i32, i32
  }
  func.func @transform_7(%arg0: i32) -> (i32, i32) {
    %c0_i32 = arith.constant 0 : i32
    %c0_i32_0 = arith.constant 0 : i32
    %c0_i32_1 = arith.constant 0 : i32
    return %c0_i32, %c0_i32_0 : i32, i32
  }
}

</mosaic_0001>

<bundles_post_ra>
// kernel: tpu_custom_call.1
= control target key start
LH: loop header
LB: loop body
LE: loop exit
PB: predicated region body
PF: predicated region fallthrough
CT: control target
= control target key end

     0   :  { %12 = vsyncpa [#allocation3], 0  ;;  %s1768_s0 = inlined_call_operand.hbm [shape: f32[8,8,128], index: 0, kind: input, shape index: {}]   ;;  %s1769_s1 = inlined_call_operand.hbm [shape: bf16[256,128], index: 1, kind: input, shape index: {}]   ;;  %s1770_s2 = inlined_call_operand.vmem [shape: f32[1,128], index: 2, kind: input, shape index: {}]   ;;  %s1771_s3 = inlined_call_operand.hbm [shape: bf16[256,128], index: 3, kind: input, shape index: {}]   ;;  %s1772_s4 = inlined_call_operand.vmem [shape: f32[1,128], index: 4, kind: input, shape index: {}]   ;;  %s1773_s5 = inlined_call_operand.hbm [shape: bf16[128,128], index: 5, kind: input, shape index: {}]   ;;  %s1774_s6 = inlined_call_operand.vmem [shape: f32[1,128], index: 6, kind: input, shape index: {}]   ;;  %s1775_s7 = inlined_call_operand.hbm [shape: f32[64,128], index: 7, kind: output, shape index: {}]  }
   0x1   :  { %13 = vsyncpa [#allocation6], 0 }
   0x2   :  { %14 = vsyncpa [#allocation9], 0  ;;  %s33_s26 = sshll.u32 %s1769_s1, 4  ;;  %s34_s26 = int_to_ptr.hbm [resolvable:$true] %s33_s26 }
   0x3   :  { %15 = vsyncpa [#allocation4], 0  ;;  %s1328_s27 = smov [#allocation5]   ;;  %s20_s8 = sshll.u32 %s1768_s0, 4  ;;  %s21_s8 = int_to_ptr.hbm [resolvable:$true] %s20_s8 }
   0x4   :  { %s35_s28 = sshll.u32 %s1328_s27, 4  ;;  %s1329_s9 = smov 64   ;;  %s36_s28 = int_to_ptr.vmem [resolvable:$true] %s35_s28 }
   0x5   :  { %s1330_s10 = smov 4   ;;  %s1331_s11 = smov [#allocation2]  }
   0x6   :  { %41 = dma.hbm_to_vmem [thread:$0]  %s34_s26, 2048, %s36_s28, [#allocation6], %s1329_s9, %s1329_s9, %s1330_s10  }
   0x7   :  { %s22_s12 = sshll.u32 %s1331_s11, 4  ;;  %s1332_s13 = smov 128   ;;  %s23_s12 = int_to_ptr.vmem [resolvable:$true] %s22_s12 }
   0x8   :  { %s1333_s14 = smov 8   ;;  %s48_s16 = sshll.u32 %s1771_s3, 4  ;;  %s49_s16 = int_to_ptr.hbm [resolvable:$true] %s48_s16 }
   0x9   :  { %28 = dma.hbm_to_vmem [thread:$0]  %s21_s8, 1024, %s23_s12, [#allocation3], %s1332_s13, %s1332_s13, %s1333_s14  }
   0xa   :  { %s1334_s17 = smov [#allocation7]   ;;  %s63_s20 = sshll.u32 %s1773_s5, 4  ;;  %s64_s20 = int_to_ptr.hbm [resolvable:$true] %s63_s20 }
   0xb   :  { %s50_s0 = sshll.u32 %s1334_s17, 4  ;;  %s1335_s21 = smov [#allocation8]   ;;  %s51_s0 = int_to_ptr.vmem [resolvable:$true] %s50_s0 }
   0xc   :  { %56 = dma.hbm_to_vmem [thread:$0]  %s49_s16, 2048, %s51_s0, [#allocation6], %s1329_s9, %s1329_s9, %s1330_s10  }
   0xd   :  { %s65_s22 = sshll.u32 %s1335_s21, 4  ;;  %s66_s22 = int_to_ptr.vmem [resolvable:$true] %s65_s22 }
   0xe   :  { %71 = dma.hbm_to_vmem [thread:$0]  %s64_s20, 1024, %s66_s22, [#allocation9], %s1329_s9, %s1329_s9, %s1330_s10  }
   0xf   :  { %1320 = dma.done.wait [#allocation3], 1024  }
  0x10   :  { %1321 = vsyncadd [#allocation3], 4294966272 }
  0x11   :  { %1322 = dma.done.wait [#allocation6], 4096  }
  0x12   :  { %1323 = vsyncadd [#allocation6], 4294963200 }
  0x13   :  { %1324 = dma.done.wait [#allocation9], 1024  }
  0x14   :  { %1325 = vsyncadd [#allocation9], 4294966272  ;;  %v1393_v0 = vld [vmem:[#allocation5 + $0x38] sm:$0xff]  ;;  %v1396_v1 = vld [vmem:[#allocation5 + $0x30] sm:$0xff]  ;;  %v1336_v18 = vmov 0.0|0.0   ;;  %s940_s28 = sshll.u32 %s1775_s7, 4  ;;  %s941_s28 = int_to_ptr.hbm [resolvable:$true] %s940_s28 }
  0x15   :  { %225 = vmatpush.bf16.msra.mxu1 %v1393_v0  ;;  %v1398_v2 = vld [vmem:[#allocation5 + $0x78] sm:$0xff]  ;;  %256 = vmatpush.bf16.msra.mxu2 %v1393_v0  ;;  %v1403_v3 = vld [vmem:[#allocation5 + $0x28] sm:$0xff]  ;;  %v1405_v4 = vld [vmem:[#allocation5 + $0x70] sm:$0xff] }
  0x16   :  { %269 = vmatpush.bf16.msra.mxu3 %v1398_v2  ;;  %v1410_v5 = vld [vmem:[#allocation5 + $0x20] sm:$0xff]  ;;  %v1412_v6 = vld [vmem:[#allocation5 + $0x68] sm:$0xff]  ;;  %v1417_v7 = vld [vmem:[#allocation5 + $0x18] sm:$0xff] }
  0x17   :  { %v1419_v8 = vld [vmem:[#allocation5 + $0x60] sm:$0xff]  ;;  %v1424_v9 = vld [vmem:[#allocation5 + $0x10] sm:$0xff]  ;;  %v1426_v10 = vld [vmem:[#allocation5 + $0x58] sm:$0xff] }
  0x18   :  { %v1431_v11 = vld [vmem:[#allocation5 + $0x8] sm:$0xff]  ;;  %v1433_v12 = vld [vmem:[#allocation5 + $0x50] sm:$0xff]  ;;  %v1438_v13 = vld [vmem:[#allocation5] sm:$0xff] }
  0x19   :  { %226 = vmatpush.bf16.msra.mxu1 %v1396_v1  ;;  %257 = vmatpush.bf16.msra.mxu2 %v1396_v1  ;;  %v90_v14 = vld [vmem:[#allocation2] sm:$0xff]  ;;  %v1440_v15 = vld [vmem:[#allocation5 + $0x48] sm:$0xff]  ;;  %v1465_v19 = vld [vmem:[#allocation7 + $0x38] sm:$0xff] }
  0x1a   :  { %270 = vmatpush.bf16.msra.mxu3 %v1405_v4  ;;  %v91_v16 = vpack.c.bf16 %v90_v14, %v90_v14  ;;  %v1445_v17 = vld [vmem:[#allocation5 + $0x40] sm:$0xff]  ;;  %474 = vmatpush.bf16.msra.mxu0 %v1465_v19  ;;  %v1469_v20 = vld [vmem:[#allocation7 + $0x30] sm:$0xff]  ;;  %v1471_v21 = vld [vmem:[#allocation7 + $0x78] sm:$0xff] }
  0x1b   :  { %v253_v22 = vld [vmem:[#allocation2 + $0x8] sm:$0xff]  ;;  %v1477_v24 = vld [vmem:[#allocation7 + $0x70] sm:$0xff]  ;;  %v1481_v26 = vld [vmem:[#allocation7 + $0x20] sm:$0xff] }
  0x1c   :  { %v1474_v23 = vld [vmem:[#allocation7 + $0x28] sm:$0xff]  ;;  %v254_v25 = vpack.c.bf16 %v253_v22, %v253_v22  ;;  %v1488_v28 = vld [vmem:[#allocation7 + $0x18] sm:$0xff]  ;;  %v1494_v29 = vld [vmem:[#allocation7 + $0x10] sm:$0xff] }
  0x1d   :  { %227 = vmatpush.bf16.msra.mxu1 %v1403_v3  ;;  %258 = vmatpush.bf16.msra.mxu2 %v1403_v3  ;;  %v1484_v27 = vld [vmem:[#allocation7 + $0x68] sm:$0xff]  ;;  %v1496_v30 = vld [vmem:[#allocation7 + $0x60] sm:$0xff]  ;;  %v1503_v33 = vld [vmem:[#allocation7 + $0x58] sm:$0xff] }
  0x1e   :  { %271 = vmatpush.bf16.msra.mxu3 %v1412_v6  ;;  %475 = vmatpush.bf16.msra.mxu0 %v1469_v20  ;;  %v1501_v32 = vld [vmem:[#allocation7 + $0x8] sm:$0xff]  ;;  %v1508_v34 = vld [vmem:[#allocation7] sm:$0xff]  ;;  %v1510_v35 = vld [vmem:[#allocation7 + $0x50] sm:$0xff] }
  0x1f   :  { %v1516_v37 = vld [vmem:[#allocation7 + $0x48] sm:$0xff]  ;;  %v1520_v38 = vld [vmem:[#allocation7 + $0x40] sm:$0xff]  ;;  %v443_v48 = vld [vmem:[#allocation2 + $0x10] sm:$0xff] }
  0x20   :  { %v1536_v39 = vld [vmem:[%s1770_s2] ss:$0 sm:$0xff]  ;;  %v444_v49 = vpack.c.bf16 %v443_v48, %v443_v48  ;;  %v502_v22 = vld [vmem:[#allocation2 + $0x18] sm:$0xff] }
  0x21   :  { %228 = vmatpush.bf16.msra.mxu1 %v1410_v5  ;;  %259 = vmatpush.bf16.msra.mxu2 %v1410_v5  ;;  %v1586_v53 = vld [vmem:[%s1772_s4] ss:$0 sm:$0xff] }
  0x22   :  { %272 = vmatpush.bf16.msra.mxu3 %v1419_v8  ;;  %476 = vmatpush.bf16.msra.mxu0 %v1474_v23 }
  0x25   :  { %229 = vmatpush.bf16.msra.mxu1 %v1417_v7  ;;  %260 = vmatpush.bf16.msra.mxu2 %v1417_v7 }
  0x26   :  { %273 = vmatpush.bf16.msra.mxu3 %v1426_v10  ;;  %477 = vmatpush.bf16.msra.mxu0 %v1481_v26 }
  0x29   :  { %230 = vmatpush.bf16.msra.mxu1 %v1424_v9  ;;  %261 = vmatpush.bf16.msra.mxu2 %v1424_v9 }
  0x2a   :  { %274 = vmatpush.bf16.msra.mxu3 %v1433_v12  ;;  %478 = vmatpush.bf16.msra.mxu0 %v1488_v28 }
  0x2d   :  { %231 = vmatpush.bf16.msra.mxu1 %v1431_v11  ;;  %262 = vmatpush.bf16.msra.mxu2 %v1431_v11 }
  0x2e   :  { %275 = vmatpush.bf16.msra.mxu3 %v1440_v15  ;;  %479 = vmatpush.bf16.msra.mxu0 %v1494_v29 }
  0x31   :  { %232 = vmatpush.bf16.msra.mxu1 %v1438_v13  ;;  %263 = vmatpush.bf16.msra.mxu2 %v1438_v13 }
  0x32   :  { %276 = vmatpush.bf16.msra.mxu3 %v1445_v17  ;;  %480 = vmatpush.bf16.msra.mxu0 %v1501_v32 }
  0x34   :  { %233 = vmatmul.bf16.vlgmr.msra.gmra.mxu1 %v91_v16  ;;  %264 = vmatmul.bf16.vlgmr.msra.gmra.mxu2 %v254_v25  ;;  %v503_v25 = vpack.c.bf16 %v502_v22, %v502_v22 }
  0x35   :  { %238 = vmatpush.bf16.msrb.mxu1 %v1398_v2  ;;  %415 = vmatpush.bf16.msrb.mxu2 %v1465_v19 }
  0x36   :  { %459 = vmatpush.bf16.msrb.mxu3 %v1398_v2  ;;  %481 = vmatpush.bf16.msra.mxu0 %v1508_v34 }
  0x39   :  { %239 = vmatpush.bf16.msrb.mxu1 %v1405_v4  ;;  %416 = vmatpush.bf16.msrb.mxu2 %v1469_v20 }
  0x3a   :  { %460 = vmatpush.bf16.msrb.mxu3 %v1405_v4  ;;  %533 = vmatpush.bf16.msrb.mxu0 %v1465_v19 }
  0x3d   :  { %240 = vmatpush.bf16.msrb.mxu1 %v1412_v6  ;;  %417 = vmatpush.bf16.msrb.mxu2 %v1474_v23 }
  0x3e   :  { %461 = vmatpush.bf16.msrb.mxu3 %v1412_v6  ;;  %534 = vmatpush.bf16.msrb.mxu0 %v1469_v20 }
  0x41   :  { %241 = vmatpush.bf16.msrb.mxu1 %v1419_v8  ;;  %418 = vmatpush.bf16.msrb.mxu2 %v1481_v26 }
  0x42   :  { %462 = vmatpush.bf16.msrb.mxu3 %v1419_v8  ;;  %535 = vmatpush.bf16.msrb.mxu0 %v1474_v23 }
  0x45   :  { %242 = vmatpush.bf16.msrb.mxu1 %v1426_v10  ;;  %419 = vmatpush.bf16.msrb.mxu2 %v1488_v28 }
  0x46   :  { %463 = vmatpush.bf16.msrb.mxu3 %v1426_v10  ;;  %536 = vmatpush.bf16.msrb.mxu0 %v1481_v26 }
  0x49   :  { %243 = vmatpush.bf16.msrb.mxu1 %v1433_v12  ;;  %420 = vmatpush.bf16.msrb.mxu2 %v1494_v29 }
  0x4a   :  { %464 = vmatpush.bf16.msrb.mxu3 %v1433_v12  ;;  %537 = vmatpush.bf16.msrb.mxu0 %v1488_v28 }
  0x4d   :  { %244 = vmatpush.bf16.msrb.mxu1 %v1440_v15  ;;  %421 = vmatpush.bf16.msrb.mxu2 %v1501_v32 }
  0x4e   :  { %465 = vmatpush.bf16.msrb.mxu3 %v1440_v15  ;;  %538 = vmatpush.bf16.msrb.mxu0 %v1494_v29 }
  0x51   :  { %245 = vmatpush.bf16.msrb.mxu1 %v1445_v17  ;;  %422 = vmatpush.bf16.msrb.mxu2 %v1508_v34 }
  0x52   :  { %466 = vmatpush.bf16.msrb.mxu3 %v1445_v17  ;;  %539 = vmatpush.bf16.msrb.mxu0 %v1501_v32 }
  0x54   :  { %246 = vmatmul.bf16.vlgmr.msrb.gmra.mxu1 %v1336_v18 }
  0x55   :  { %428 = vmatpush.bf16.msra.mxu1 %v1471_v21  ;;  %446 = vmatpush.bf16.msra.mxu2 %v1393_v0 }
  0x56   :  { %540 = vmatpush.bf16.msrb.mxu0 %v1508_v34 }
  0x59   :  { %429 = vmatpush.bf16.msra.mxu1 %v1477_v24  ;;  %447 = vmatpush.bf16.msra.mxu2 %v1396_v1 }
  0x5d   :  { %430 = vmatpush.bf16.msra.mxu1 %v1484_v27  ;;  %448 = vmatpush.bf16.msra.mxu2 %v1403_v3 }
  0x61   :  { %431 = vmatpush.bf16.msra.mxu1 %v1496_v30  ;;  %449 = vmatpush.bf16.msra.mxu2 %v1410_v5 }
  0x65   :  { %432 = vmatpush.bf16.msra.mxu1 %v1503_v33  ;;  %450 = vmatpush.bf16.msra.mxu2 %v1417_v7 }
  0x69   :  { %433 = vmatpush.bf16.msra.mxu1 %v1510_v35  ;;  %451 = vmatpush.bf16.msra.mxu2 %v1424_v9 }
  0x6d   :  { %434 = vmatpush.bf16.msra.mxu1 %v1516_v37  ;;  %452 = vmatpush.bf16.msra.mxu2 %v1431_v11 }
  0x71   :  { %435 = vmatpush.bf16.msra.mxu1 %v1520_v38  ;;  %453 = vmatpush.bf16.msra.mxu2 %v1438_v13 }
  0x74   :  { %436 = vmatmul.bf16.vlgmr.msra.gmra.mxu1 %v1336_v18 }
  0x75   :  { %487 = vmatpush.bf16.msrb.mxu1 %v1471_v21 }
  0x79   :  { %488 = vmatpush.bf16.msrb.mxu1 %v1477_v24 }
  0x7d   :  { %489 = vmatpush.bf16.msrb.mxu1 %v1484_v27 }
  0x81   :  { %490 = vmatpush.bf16.msrb.mxu1 %v1496_v30 }
  0x85   :  { %491 = vmatpush.bf16.msrb.mxu1 %v1503_v33 }
  0x89   :  { %492 = vmatpush.bf16.msrb.mxu1 %v1510_v35 }
  0x8d   :  { %493 = vmatpush.bf16.msrb.mxu1 %v1516_v37 }
  0x91   :  { %494 = vmatpush.bf16.msrb.mxu1 %v1520_v38 }
  0x95   :  { %546 = vmatpush.bf16.msra.mxu1 %v1471_v21 }
  0x99   :  { %547 = vmatpush.bf16.msra.mxu1 %v1477_v24 }
  0x9d   :  { %548 = vmatpush.bf16.msra.mxu1 %v1484_v27 }
  0xa1   :  { %549 = vmatpush.bf16.msra.mxu1 %v1496_v30 }
  0xa5   :  { %550 = vmatpush.bf16.msra.mxu1 %v1503_v33 }
  0xa9   :  { %551 = vmatpush.bf16.msra.mxu1 %v1510_v35 }
  0xad   :  { %552 = vmatpush.bf16.msra.mxu1 %v1516_v37 }
  0xb1   :  { %v234_v31 = vpop.f32.mrf.mxu1  ;;  %553 = vmatpush.bf16.msra.mxu1 %v1520_v38 }
  0xb2   :  { %v235_v40 = vadd.f32 %v1536_v39, %v234_v31 }
  0xb7   :  { %v265_v46 = vpop.f32.mrf.mxu2 }
  0xb8   :  { %v266_v52 = vadd.f32 %v1536_v39, %v265_v46 }
  0xb9   :  { %v236_v36 = vpop.f32.mrf.mxu1 }
  0xbf   :  { %v267_v47 = vpop.f32.mrf.mxu2 }
  0xd1   :  { %v247_v41 = vpop.f32.mrf.mxu1 }
  0xd2   :  { %v248_v42 = vadd.f32 %v247_v41, %v235_v40 }
  0xd4   :  { %1168 = vtanh.f32 %v248_v42 }
  0xd9   :  { %v249_v43 = vpop.f32.mrf.mxu1 }
  0xda   :  { %v1169_v44 = vpop.eup %1168 }
  0xdb   :  { %v255_v45 = vpack.c.bf16 %v1169_v44, %v1169_v44 }
  0xdd   :  { %277 = vmatmul.bf16.vlgmr.msra.gmra.mxu3 %v255_v45  ;;  %423 = vmatmul.bf16.vlgmr.msrb.gmra.mxu2 %v255_v45 }
  0xde   :  { %505 = vmatpush.bf16.msrb.mxu2 %v1393_v0  ;;  %518 = vmatpush.bf16.msra.mxu3 %v1398_v2 }
  0xe2   :  { %506 = vmatpush.bf16.msrb.mxu2 %v1396_v1  ;;  %519 = vmatpush.bf16.msra.mxu3 %v1405_v4 }
  0xe6   :  { %507 = vmatpush.bf16.msrb.mxu2 %v1403_v3  ;;  %520 = vmatpush.bf16.msra.mxu3 %v1412_v6 }
  0xea   :  { %508 = vmatpush.bf16.msrb.mxu2 %v1410_v5  ;;  %521 = vmatpush.bf16.msra.mxu3 %v1419_v8 }
  0xed   :  { %454 = vmatmul.bf16.vlgmr.msra.gmra.mxu2 %v444_v49 }
  0xee   :  { %509 = vmatpush.bf16.msrb.mxu2 %v1417_v7  ;;  %522 = vmatpush.bf16.msra.mxu3 %v1426_v10 }
  0xf1   :  { %v437_v50 = vpop.f32.mrf.mxu1 }
  0xf2   :  { %510 = vmatpush.bf16.msrb.mxu2 %v1424_v9  ;;  %523 = vmatpush.bf16.msra.mxu3 %v1433_v12 }
  0xf6   :  { %511 = vmatpush.bf16.msrb.mxu2 %v1431_v11  ;;  %524 = vmatpush.bf16.msra.mxu3 %v1440_v15 }
  0xf9   :  { %v439_v51 = vpop.f32.mrf.mxu1 }
  0xfa   :  { %512 = vmatpush.bf16.msrb.mxu2 %v1438_v13  ;;  %525 = vmatpush.bf16.msra.mxu3 %v1445_v17 }
  0xfd   :  { %513 = vmatmul.bf16.vlgmr.msrb.gmra.mxu2 %v503_v25 }
  0xfe   :  { %564 = vmatpush.bf16.msra.mxu2 %v1393_v0 }
 0x102   :  { %565 = vmatpush.bf16.msra.mxu2 %v1396_v1 }
 0x106   :  { %566 = vmatpush.bf16.msra.mxu2 %v1403_v3 }
 0x10a   :  { %567 = vmatpush.bf16.msra.mxu2 %v1410_v5 }
 0x10e   :  { %568 = vmatpush.bf16.msra.mxu2 %v1417_v7 }
 0x112   :  { %569 = vmatpush.bf16.msra.mxu2 %v1424_v9 }
 0x116   :  { %570 = vmatpush.bf16.msra.mxu2 %v1431_v11 }
 0x11a   :  { %571 = vmatpush.bf16.msra.mxu2 %v1438_v13 }
 0x11e   :  { %623 = vmatpush.bf16.msrb.mxu2 %v1393_v0 }
 0x122   :  { %624 = vmatpush.bf16.msrb.mxu2 %v1396_v1 }
 0x126   :  { %625 = vmatpush.bf16.msrb.mxu2 %v1403_v3 }
 0x12a   :  { %626 = vmatpush.bf16.msrb.mxu2 %v1410_v5 }
 0x12e   :  { %627 = vmatpush.bf16.msrb.mxu2 %v1417_v7 }
 0x132   :  { %628 = vmatpush.bf16.msrb.mxu2 %v1424_v9 }
 0x136   :  { %629 = vmatpush.bf16.msrb.mxu2 %v1431_v11 }
 0x13a   :  { %630 = vmatpush.bf16.msrb.mxu2 %v1438_v13 }
 0x160   :  { %v278_v54 = vpop.f32.mrf.mxu3  ;;  %v424_v55 = vpop.f32.mrf.mxu2 }
 0x161   :  { %v279_v56 = vadd.f32 %v278_v54, %v266_v52  ;;  %v425_v57 = vadd.f32 %v1586_v53, %v424_v55  ;;  %v561_v55 = vld [vmem:[#allocation2 + $0x20] sm:$0xff] }
 0x163   :  { %1170 = vtanh.f32 %v279_v56  ;;  %v438_v58 = vadd.f32 %v437_v50, %v425_v57  ;;  %v562_v56 = vpack.c.bf16 %v561_v55, %v561_v55 }
 0x165   :  { %1172 = vtanh.f32 %v438_v58  ;;  %572 = vmatmul.bf16.vlgmr.msra.gmra.mxu2 %v562_v56 }
 0x166   :  { %682 = vmatpush.bf16.msra.mxu2 %v1393_v0 }
 0x168   :  { %v280_v59 = vpop.f32.mrf.mxu3  ;;  %v426_v60 = vpop.f32.mrf.mxu2 }
 0x169   :  { %v1171_v61 = vpop.eup %1170 }
 0x16a   :  { %v445_v62 = vpack.c.bf16 %v1171_v61, %v1171_v61  ;;  %683 = vmatpush.bf16.msra.mxu2 %v1396_v1 }
 0x16b   :  { %v1590_v63 = vpop.eup %1172 }
 0x16c   :  { %467 = vmatmul.bf16.vlgmr.msrb.gmra.mxu3 %v445_v62  ;;  %482 = vmatmul.bf16.vlgmr.msra.gmra.mxu0 %v445_v62  ;;  %v473_v14 = vpack.c.bf16 %v1590_v63, %v1590_v63 }
 0x16d   :  { %577 = vmatpush.bf16.msrb.mxu3 %v1398_v2  ;;  %592 = vmatpush.bf16.msra.mxu0 %v1465_v19 }
 0x16e   :  { %495 = vmatmul.bf16.vlgmr.msrb.gmra.mxu1 %v473_v14  ;;  %684 = vmatpush.bf16.msra.mxu2 %v1403_v3 }
 0x16f   :  { %605 = vmatpush.bf16.msrb.mxu1 %v1471_v21 }
 0x170   :  { %v455_v16 = vpop.f32.mrf.mxu2 }
 0x171   :  { %578 = vmatpush.bf16.msrb.mxu3 %v1405_v4  ;;  %593 = vmatpush.bf16.msra.mxu0 %v1469_v20  ;;  %v456_v41 = vadd.f32 %v1536_v39, %v455_v16 }
 0x172   :  { %685 = vmatpush.bf16.msra.mxu2 %v1410_v5 }
 0x173   :  { %606 = vmatpush.bf16.msrb.mxu1 %v1477_v24 }
 0x175   :  { %579 = vmatpush.bf16.msrb.mxu3 %v1412_v6  ;;  %594 = vmatpush.bf16.msra.mxu0 %v1474_v23 }
 0x176   :  { %686 = vmatpush.bf16.msra.mxu2 %v1417_v7 }
 0x177   :  { %607 = vmatpush.bf16.msrb.mxu1 %v1484_v27 }
 0x178   :  { %v457_v18 = vpop.f32.mrf.mxu2 }
 0x179   :  { %580 = vmatpush.bf16.msrb.mxu3 %v1419_v8  ;;  %595 = vmatpush.bf16.msra.mxu0 %v1481_v26 }
 0x17a   :  { %687 = vmatpush.bf16.msra.mxu2 %v1424_v9 }
 0x17b   :  { %608 = vmatpush.bf16.msrb.mxu1 %v1496_v30 }
 0x17d   :  { %581 = vmatpush.bf16.msrb.mxu3 %v1426_v10  ;;  %596 = vmatpush.bf16.msra.mxu0 %v1488_v28 }
 0x17e   :  { %688 = vmatpush.bf16.msra.mxu2 %v1431_v11 }
 0x17f   :  { %609 = vmatpush.bf16.msrb.mxu1 %v1503_v33 }
 0x180   :  { %v514_v52 = vpop.f32.mrf.mxu2 }
 0x181   :  { %582 = vmatpush.bf16.msrb.mxu3 %v1433_v12  ;;  %597 = vmatpush.bf16.msra.mxu0 %v1494_v29  ;;  %v515_v60 = vadd.f32 %v1536_v39, %v514_v52 }
 0x182   :  { %689 = vmatpush.bf16.msra.mxu2 %v1438_v13 }
 0x183   :  { %610 = vmatpush.bf16.msrb.mxu1 %v1510_v35 }
 0x185   :  { %583 = vmatpush.bf16.msrb.mxu3 %v1440_v15  ;;  %598 = vmatpush.bf16.msra.mxu0 %v1501_v32 }
 0x187   :  { %611 = vmatpush.bf16.msrb.mxu1 %v1516_v37 }
 0x188   :  { %v516_v54 = vpop.f32.mrf.mxu2 }
 0x189   :  { %584 = vmatpush.bf16.msrb.mxu3 %v1445_v17  ;;  %599 = vmatpush.bf16.msra.mxu0 %v1508_v34 }
 0x18b   :  { %612 = vmatpush.bf16.msrb.mxu1 %v1520_v38 }
 0x1e9   :  { %v483_v31 = vpop.f32.mrf.mxu0 }
 0x1ea   :  { %v484_v36 = vadd.f32 %v1586_v53, %v483_v31 }
 0x1eb   :  { %v496_v40 = vpop.f32.mrf.mxu1 }
 0x1ec   :  { %v497_v42 = vadd.f32 %v496_v40, %v484_v36 }
 0x1ee   :  { %1174 = vtanh.f32 %v497_v42 }
 0x1ef   :  { %v468_v43 = vpop.f32.mrf.mxu3 }
 0x1f0   :  { %v469_v44 = vadd.f32 %v468_v43, %v456_v41  ;;  %v573_v41 = vpop.f32.mrf.mxu2  ;;  %v620_v43 = vld [vmem:[#allocation2 + $0x28] sm:$0xff] }
 0x1f1   :  { %v485_v45 = vpop.f32.mrf.mxu0 }
 0x1f2   :  { %1176 = vtanh.f32 %v469_v44  ;;  %v621_v44 = vpack.c.bf16 %v620_v43, %v620_v43 }
 0x1f3   :  { %v498_v46 = vpop.f32.mrf.mxu1 }
 0x1f4   :  { %v1628_v47 = vpop.eup %1174  ;;  %631 = vmatmul.bf16.vlgmr.msrb.gmra.mxu2 %v621_v44 }
 0x1f5   :  { %v532_v48 = vpack.c.bf16 %v1628_v47, %v1628_v47  ;;  %741 = vmatpush.bf16.msrb.mxu2 %v1393_v0  ;;  %v825_v44 = vpack.c.bf16 %v1628_v47, %v1590_v63 }
 0x1f7   :  { %v470_v49 = vpop.f32.mrf.mxu3  ;;  %554 = vmatmul.bf16.vlgmr.msra.gmra.mxu1 %v532_v48 }
 0x1f8   :  { %v1177_v50 = vpop.eup %1176  ;;  %664 = vmatpush.bf16.msra.mxu1 %v1471_v21  ;;  %v575_v42 = vpop.f32.mrf.mxu2  ;;  %v574_v49 = vadd.f32 %v1536_v39, %v573_v41 }
 0x1f9   :  { %v504_v51 = vpack.c.bf16 %v1177_v50, %v1177_v50  ;;  %742 = vmatpush.bf16.msrb.mxu2 %v1396_v1 }
 0x1fb   :  { %526 = vmatmul.bf16.vlgmr.msra.gmra.mxu3 %v504_v51  ;;  %541 = vmatmul.bf16.vlgmr.msrb.gmra.mxu0 %v504_v51 }
 0x1fc   :  { %636 = vmatpush.bf16.msra.mxu3 %v1398_v2  ;;  %651 = vmatpush.bf16.msrb.mxu0 %v1465_v19 }
 0x1fd   :  { %665 = vmatpush.bf16.msra.mxu1 %v1477_v24  ;;  %743 = vmatpush.bf16.msrb.mxu2 %v1403_v3 }
 0x200   :  { %637 = vmatpush.bf16.msra.mxu3 %v1405_v4  ;;  %652 = vmatpush.bf16.msrb.mxu0 %v1469_v20 }
 0x201   :  { %666 = vmatpush.bf16.msra.mxu1 %v1484_v27  ;;  %744 = vmatpush.bf16.msrb.mxu2 %v1410_v5 }
 0x204   :  { %638 = vmatpush.bf16.msra.mxu3 %v1412_v6  ;;  %653 = vmatpush.bf16.msrb.mxu0 %v1474_v23 }
 0x205   :  { %667 = vmatpush.bf16.msra.mxu1 %v1496_v30  ;;  %745 = vmatpush.bf16.msrb.mxu2 %v1417_v7 }
 0x208   :  { %639 = vmatpush.bf16.msra.mxu3 %v1419_v8  ;;  %654 = vmatpush.bf16.msrb.mxu0 %v1481_v26 }
 0x209   :  { %668 = vmatpush.bf16.msra.mxu1 %v1503_v33  ;;  %746 = vmatpush.bf16.msrb.mxu2 %v1424_v9 }
 0x20c   :  { %640 = vmatpush.bf16.msra.mxu3 %v1426_v10  ;;  %655 = vmatpush.bf16.msrb.mxu0 %v1488_v28 }
 0x20d   :  { %669 = vmatpush.bf16.msra.mxu1 %v1510_v35  ;;  %747 = vmatpush.bf16.msrb.mxu2 %v1431_v11 }
 0x210   :  { %641 = vmatpush.bf16.msra.mxu3 %v1433_v12  ;;  %656 = vmatpush.bf16.msrb.mxu0 %v1494_v29 }
 0x211   :  { %670 = vmatpush.bf16.msra.mxu1 %v1516_v37  ;;  %748 = vmatpush.bf16.msrb.mxu2 %v1438_v13 }
 0x214   :  { %642 = vmatpush.bf16.msra.mxu3 %v1440_v15  ;;  %657 = vmatpush.bf16.msrb.mxu0 %v1501_v32 }
 0x215   :  { %671 = vmatpush.bf16.msra.mxu1 %v1520_v38 }
 0x218   :  { %643 = vmatpush.bf16.msra.mxu3 %v1445_v17  ;;  %658 = vmatpush.bf16.msrb.mxu0 %v1508_v34 }
 0x274   :  { %v555_v57 = vpop.f32.mrf.mxu1 }
 0x278   :  { %v542_v58 = vpop.f32.mrf.mxu0 }
 0x279   :  { %v543_v59 = vadd.f32 %v1586_v53, %v542_v58  ;;  %v1153_v58 = vld [vmem:[#allocation8 + $0x30] sm:$0xff] }
 0x27b   :  { %v556_v61 = vadd.f32 %v555_v57, %v543_v59 }
 0x27c   :  { %v557_v62 = vpop.f32.mrf.mxu1 }
 0x27d   :  { %1178 = vtanh.f32 %v556_v61 }
 0x27e   :  { %v527_v14 = vpop.f32.mrf.mxu3 }
 0x27f   :  { %v528_v16 = vadd.f32 %v527_v14, %v515_v60 }
 0x280   :  { %v544_v18 = vpop.f32.mrf.mxu0 }
 0x281   :  { %1180 = vtanh.f32 %v528_v16 }
 0x283   :  { %v1666_v22 = vpop.eup %1178 }
 0x284   :  { %v591_v25 = vpack.c.bf16 %v1666_v22, %v1666_v22 }
 0x286   :  { %v529_v31 = vpop.f32.mrf.mxu3  ;;  %613 = vmatmul.bf16.vlgmr.msrb.gmra.mxu1 %v591_v25 }
 0x287   :  { %v1181_v36 = vpop.eup %1180  ;;  %723 = vmatpush.bf16.msrb.mxu1 %v1471_v21 }
 0x288   :  { %v563_v40 = vpack.c.bf16 %v1181_v36, %v1181_v36 }
 0x28a   :  { %585 = vmatmul.bf16.vlgmr.msrb.gmra.mxu3 %v563_v40  ;;  %600 = vmatmul.bf16.vlgmr.msra.gmra.mxu0 %v563_v40 }
 0x28b   :  { %695 = vmatpush.bf16.msrb.mxu3 %v1398_v2  ;;  %710 = vmatpush.bf16.msra.mxu0 %v1465_v19 }
 0x28c   :  { %724 = vmatpush.bf16.msrb.mxu1 %v1477_v24 }
 0x28f   :  { %696 = vmatpush.bf16.msrb.mxu3 %v1405_v4  ;;  %711 = vmatpush.bf16.msra.mxu0 %v1469_v20 }
 0x290   :  { %725 = vmatpush.bf16.msrb.mxu1 %v1484_v27 }
 0x293   :  { %697 = vmatpush.bf16.msrb.mxu3 %v1412_v6  ;;  %712 = vmatpush.bf16.msra.mxu0 %v1474_v23 }
 0x294   :  { %726 = vmatpush.bf16.msrb.mxu1 %v1496_v30 }
 0x297   :  { %698 = vmatpush.bf16.msrb.mxu3 %v1419_v8  ;;  %713 = vmatpush.bf16.msra.mxu0 %v1481_v26 }
 0x298   :  { %727 = vmatpush.bf16.msrb.mxu1 %v1503_v33 }
 0x29b   :  { %699 = vmatpush.bf16.msrb.mxu3 %v1426_v10  ;;  %714 = vmatpush.bf16.msra.mxu0 %v1488_v28 }
 0x29c   :  { %728 = vmatpush.bf16.msrb.mxu1 %v1510_v35 }
 0x29f   :  { %700 = vmatpush.bf16.msrb.mxu3 %v1433_v12  ;;  %715 = vmatpush.bf16.msra.mxu0 %v1494_v29 }
 0x2a0   :  { %729 = vmatpush.bf16.msrb.mxu1 %v1516_v37 }
 0x2a3   :  { %701 = vmatpush.bf16.msrb.mxu3 %v1440_v15  ;;  %716 = vmatpush.bf16.msra.mxu0 %v1501_v32 }
 0x2a4   :  { %730 = vmatpush.bf16.msrb.mxu1 %v1520_v38 }
 0x2a7   :  { %702 = vmatpush.bf16.msrb.mxu3 %v1445_v17  ;;  %717 = vmatpush.bf16.msra.mxu0 %v1508_v34 }
 0x303   :  { %v614_v45 = vpop.f32.mrf.mxu1 }
 0x307   :  { %v601_v46 = vpop.f32.mrf.mxu0 }
 0x308   :  { %v602_v48 = vadd.f32 %v1586_v53, %v601_v46 }
 0x30a   :  { %v615_v50 = vadd.f32 %v614_v45, %v602_v48 }
 0x30b   :  { %v616_v0 = vpop.f32.mrf.mxu1 }
 0x30c   :  { %1182 = vtanh.f32 %v615_v50 }
 0x30d   :  { %v586_v1 = vpop.f32.mrf.mxu3 }
 0x30e   :  { %v587_v3 = vadd.f32 %v586_v1, %v574_v49 }
 0x30f   :  { %v603_v5 = vpop.f32.mrf.mxu0 }
 0x310   :  { %1184 = vtanh.f32 %v587_v3 }
 0x312   :  { %v1704_v7 = vpop.eup %1182 }
 0x313   :  { %v650_v9 = vpack.c.bf16 %v1704_v7, %v1704_v7  ;;  %v826_v45 = vpack.c.bf16 %v1704_v7, %v1666_v22  ;;  %v1167_v7 = vld [vmem:[%s1774_s6] ss:$0 sm:$0xff]  ;;  %s1337_s6 = smov [#allocation10]  }
 0x314   :  { %s938_s25 = sshll.u32 %s1337_s6, 4  ;;  %s939_s25 = int_to_ptr.vmem [resolvable:$true] %s938_s25 }
 0x315   :  { %v588_v51 = vpop.f32.mrf.mxu3  ;;  %672 = vmatmul.bf16.vlgmr.msra.gmra.mxu1 %v650_v9 }
 0x316   :  { %v1185_v52 = vpop.eup %1184  ;;  %782 = vmatpush.bf16.msra.mxu1 %v1471_v21 }
 0x317   :  { %v622_v11 = vpack.c.bf16 %v1185_v52, %v1185_v52 }
 0x319   :  { %644 = vmatmul.bf16.vlgmr.msra.gmra.mxu3 %v622_v11  ;;  %659 = vmatmul.bf16.vlgmr.msrb.gmra.mxu0 %v622_v11 }
 0x31a   :  { %769 = vmatpush.bf16.msrb.mxu0 %v1465_v19  ;;  %754 = vmatpush.bf16.msra.mxu3 %v1398_v2  ;;  %v632_v2 = vpop.f32.mrf.mxu2 }
 0x31b   :  { %783 = vmatpush.bf16.msra.mxu1 %v1477_v24 }
 0x31e   :  { %770 = vmatpush.bf16.msrb.mxu0 %v1469_v20  ;;  %755 = vmatpush.bf16.msra.mxu3 %v1405_v4 }
 0x31f   :  { %784 = vmatpush.bf16.msra.mxu1 %v1484_v27 }
 0x322   :  { %771 = vmatpush.bf16.msrb.mxu0 %v1474_v23  ;;  %756 = vmatpush.bf16.msra.mxu3 %v1412_v6  ;;  %v634_v4 = vpop.f32.mrf.mxu2  ;;  %v679_v6 = vld [vmem:[#allocation2 + $0x30] sm:$0xff] }
 0x323   :  { %785 = vmatpush.bf16.msra.mxu1 %v1496_v30 }
 0x326   :  { %772 = vmatpush.bf16.msrb.mxu0 %v1481_v26  ;;  %757 = vmatpush.bf16.msra.mxu3 %v1419_v8  ;;  %v680_v8 = vpack.c.bf16 %v679_v6, %v679_v6 }
 0x327   :  { %786 = vmatpush.bf16.msra.mxu1 %v1503_v33 }
 0x328   :  { %690 = vmatmul.bf16.vlgmr.msra.gmra.mxu2 %v680_v8 }
 0x329   :  { %798 = vmatpush.bf16.msra.mxu2 %v1465_v19 }
 0x32a   :  { %773 = vmatpush.bf16.msrb.mxu0 %v1488_v28  ;;  %758 = vmatpush.bf16.msra.mxu3 %v1426_v10 }
 0x32b   :  { %787 = vmatpush.bf16.msra.mxu1 %v1510_v35 }
 0x32d   :  { %799 = vmatpush.bf16.msra.mxu2 %v1469_v20 }
 0x32e   :  { %774 = vmatpush.bf16.msrb.mxu0 %v1494_v29  ;;  %759 = vmatpush.bf16.msra.mxu3 %v1433_v12 }
 0x32f   :  { %788 = vmatpush.bf16.msra.mxu1 %v1516_v37 }
 0x331   :  { %800 = vmatpush.bf16.msra.mxu2 %v1474_v23 }
 0x332   :  { %775 = vmatpush.bf16.msrb.mxu0 %v1501_v32  ;;  %760 = vmatpush.bf16.msra.mxu3 %v1440_v15  ;;  %v633_v15 = vadd.f32 %v1536_v39, %v632_v2 }
 0x333   :  { %789 = vmatpush.bf16.msra.mxu1 %v1520_v38 }
 0x335   :  { %801 = vmatpush.bf16.msra.mxu2 %v1481_v26 }
 0x336   :  { %776 = vmatpush.bf16.msrb.mxu0 %v1508_v34  ;;  %761 = vmatpush.bf16.msra.mxu3 %v1445_v17 }
 0x339   :  { %802 = vmatpush.bf16.msra.mxu2 %v1488_v28 }
 0x33d   :  { %803 = vmatpush.bf16.msra.mxu2 %v1494_v29 }
 0x341   :  { %804 = vmatpush.bf16.msra.mxu2 %v1501_v32 }
 0x345   :  { %805 = vmatpush.bf16.msra.mxu2 %v1508_v34  ;;  %v1154_v34 = vld [vmem:[#allocation8 + $0x38] sm:$0xff] }
 0x392   :  { %v673_v10 = vpop.f32.mrf.mxu1 }
 0x396   :  { %v660_v12 = vpop.f32.mrf.mxu0 }
 0x397   :  { %v661_v13 = vadd.f32 %v1586_v53, %v660_v12 }
 0x399   :  { %v674_v17 = vadd.f32 %v673_v10, %v661_v13 }
 0x39a   :  { %v675_v19 = vpop.f32.mrf.mxu1 }
 0x39b   :  { %1186 = vtanh.f32 %v674_v17 }
 0x39c   :  { %v645_v20 = vpop.f32.mrf.mxu3 }
 0x39d   :  { %v646_v23 = vadd.f32 %v645_v20, %v633_v15 }
 0x39e   :  { %v662_v26 = vpop.f32.mrf.mxu0 }
 0x39f   :  { %1188 = vtanh.f32 %v646_v23 }
 0x3a1   :  { %v1187_v28 = vpop.eup %1186 }
 0x3a2   :  { %v709_v54 = vpack.c.bf16 %v1187_v28, %v1187_v28 }
 0x3a4   :  { %v647_v55 = vpop.f32.mrf.mxu3  ;;  %731 = vmatmul.bf16.vlgmr.msrb.gmra.mxu1 %v709_v54 }
 0x3a5   :  { %v1189_v29 = vpop.eup %1188 }
 0x3a6   :  { %v681_v56 = vpack.c.bf16 %v1189_v29, %v1189_v29 }
 0x3a8   :  { %703 = vmatmul.bf16.vlgmr.msrb.gmra.mxu3 %v681_v56  ;;  %718 = vmatmul.bf16.vlgmr.msra.gmra.mxu0 %v681_v56 }
 0x3a9   :  { %811 = vmatpush.bf16.msrb.mxu3 %v1471_v21  ;;  %897 = vmatpush.bf16.msra.mxu0 %v1154_v34  ;;  %v738_v21 = vld [vmem:[#allocation2 + $0x38] sm:$0xff] }
 0x3aa   :  { %v739_v59 = vpack.c.bf16 %v738_v21, %v738_v21 }
 0x3ab   :  { %v691_v32 = vpop.f32.mrf.mxu2 }
 0x3ac   :  { %749 = vmatmul.bf16.vlgmr.msrb.gmra.mxu2 %v739_v59  ;;  %v692_v62 = vadd.f32 %v1536_v39, %v691_v32 }
 0x3ad   :  { %812 = vmatpush.bf16.msrb.mxu3 %v1477_v24  ;;  %898 = vmatpush.bf16.msra.mxu0 %v1153_v58  ;;  %v1152_v24 = vld [vmem:[#allocation8 + $0x28] sm:$0xff] }
 0x3b1   :  { %813 = vmatpush.bf16.msrb.mxu3 %v1484_v27  ;;  %899 = vmatpush.bf16.msra.mxu0 %v1152_v24  ;;  %v1151_v27 = vld [vmem:[#allocation8 + $0x20] sm:$0xff] }
 0x3b3   :  { %v693_v57 = vpop.f32.mrf.mxu2 }
 0x3b5   :  { %814 = vmatpush.bf16.msrb.mxu3 %v1496_v30  ;;  %900 = vmatpush.bf16.msra.mxu0 %v1151_v27  ;;  %v1150_v30 = vld [vmem:[#allocation8 + $0x18] sm:$0xff] }
 0x3b9   :  { %815 = vmatpush.bf16.msrb.mxu3 %v1503_v33  ;;  %901 = vmatpush.bf16.msra.mxu0 %v1150_v30  ;;  %v1149_v33 = vld [vmem:[#allocation8 + $0x10] sm:$0xff] }
 0x3bd   :  { %816 = vmatpush.bf16.msrb.mxu3 %v1510_v35  ;;  %902 = vmatpush.bf16.msra.mxu0 %v1149_v33  ;;  %v1148_v35 = vld [vmem:[#allocation8 + $0x8] sm:$0xff] }
 0x3c1   :  { %817 = vmatpush.bf16.msrb.mxu3 %v1516_v37  ;;  %903 = vmatpush.bf16.msra.mxu0 %v1148_v35  ;;  %v1147_v37 = vld [vmem:[#allocation8] sm:$0xff] }
 0x3c5   :  { %818 = vmatpush.bf16.msrb.mxu3 %v1520_v38  ;;  %904 = vmatpush.bf16.msra.mxu0 %v1147_v37 }
 0x421   :  { %v732_v38 = vpop.f32.mrf.mxu1 }
 0x425   :  { %v719_v60 = vpop.f32.mrf.mxu0 }
 0x426   :  { %v720_v61 = vadd.f32 %v1586_v53, %v719_v60 }
 0x428   :  { %v733_v14 = vadd.f32 %v732_v38, %v720_v61 }
 0x429   :  { %v734_v16 = vpop.f32.mrf.mxu1 }
 0x42a   :  { %1190 = vtanh.f32 %v733_v14 }
 0x42b   :  { %v704_v18 = vpop.f32.mrf.mxu3 }
 0x42c   :  { %v705_v25 = vadd.f32 %v704_v18, %v692_v62 }
 0x42d   :  { %v721_v31 = vpop.f32.mrf.mxu0 }
 0x42e   :  { %1192 = vtanh.f32 %v705_v25 }
 0x42f   :  { %v750_v48 = vpop.f32.mrf.mxu2 }
 0x430   :  { %v1191_v36 = vpop.eup %1190  ;;  %v751_v3 = vadd.f32 %v1536_v39, %v750_v48 }
 0x431   :  { %v768_v40 = vpack.c.bf16 %v1191_v36, %v1191_v36  ;;  %v827_v46 = vpack.c.bf16 %v1191_v36, %v1187_v28 }
 0x433   :  { %v706_v41 = vpop.f32.mrf.mxu3  ;;  %790 = vmatmul.bf16.vlgmr.msra.gmra.mxu1 %v768_v40 }
 0x434   :  { %v1193_v42 = vpop.eup %1192 }
 0x435   :  { %v740_v43 = vpack.c.bf16 %v1193_v42, %v1193_v42 }
 0x437   :  { %762 = vmatmul.bf16.vlgmr.msra.gmra.mxu3 %v740_v43  ;;  %777 = vmatmul.bf16.vlgmr.msrb.gmra.mxu0 %v740_v43  ;;  %v752_v49 = vpop.f32.mrf.mxu2 }
 0x447   :  { %905 = vmatmul.bf16.vlgmr.msra.gmra.mxu0 %v825_v44 }
 0x457   :  { %910 = vmatmul.bf16.gmra.mxu0 %v826_v45 }
 0x467   :  { %915 = vmatmul.bf16.gmra.mxu0 %v827_v46 }
 0x4b0   :  { %v791_v50 = vpop.f32.mrf.mxu1 }
 0x4b4   :  { %v778_v0 = vpop.f32.mrf.mxu0 }
 0x4b5   :  { %v779_v1 = vadd.f32 %v1586_v53, %v778_v0 }
 0x4b7   :  { %v792_v5 = vadd.f32 %v791_v50, %v779_v1 }
 0x4b8   :  { %v793_v9 = vpop.f32.mrf.mxu1 }
 0x4b9   :  { %1194 = vtanh.f32 %v792_v5 }
 0x4ba   :  { %v763_v51 = vpop.f32.mrf.mxu3 }
 0x4bb   :  { %v764_v63 = vadd.f32 %v763_v51, %v751_v3 }
 0x4bc   :  { %v780_v47 = vpop.f32.mrf.mxu0 }
 0x4bd   :  { %1196 = vtanh.f32 %v764_v63 }
 0x4bf   :  { %v1195_v52 = vpop.eup %1194 }
 0x4c0   :  { %v797_v22 = vpack.c.bf16 %v1195_v52, %v1195_v52 }
 0x4c2   :  { %v765_v11 = vpop.f32.mrf.mxu3  ;;  %819 = vmatmul.bf16.vlgmr.msrb.gmra.mxu3 %v797_v22 }
 0x4c3   :  { %v1197_v2 = vpop.eup %1196 }
 0x4c4   :  { %v796_v4 = vpack.c.bf16 %v1197_v2, %v1197_v2  ;;  %v906_v6 = vpop.f32.mrf.mxu0 }
 0x4c5   :  { %v907_v8 = vadd.f32 %v1167_v7, %v906_v6 }
 0x4c6   :  { %806 = vmatmul.bf16.vlgmr.msra.gmra.mxu2 %v796_v4 }
 0x4c7   :  { %926 = vst [vmem:[#allocation10] sm:$0xff] %v907_v8 }
 0x4cc   :  { %v908_v39 = vpop.f32.mrf.mxu0 }
 0x4cd   :  { %v909_v10 = vadd.f32 %v1167_v7, %v908_v39 }
 0x4cf   :  { %927 = vst [vmem:[#allocation10 + $0x8] sm:$0xff] %v909_v10 }
 0x4d4   :  { %v911_v12 = vpop.f32.mrf.mxu0 }
 0x4d5   :  { %v912_v13 = vadd.f32 %v1167_v7, %v911_v12 }
 0x4d7   :  { %928 = vst [vmem:[#allocation10 + $0x10] sm:$0xff] %v912_v13 }
 0x4dc   :  { %v913_v15 = vpop.f32.mrf.mxu0 }
 0x4dd   :  { %v914_v17 = vadd.f32 %v1167_v7, %v913_v15 }
 0x4df   :  { %929 = vst [vmem:[#allocation10 + $0x18] sm:$0xff] %v914_v17 }
 0x4e4   :  { %v916_v19 = vpop.f32.mrf.mxu0 }
 0x4e5   :  { %v917_v20 = vadd.f32 %v1167_v7, %v916_v19 }
 0x4e7   :  { %930 = vst [vmem:[#allocation10 + $0x20] sm:$0xff] %v917_v20 }
 0x4ec   :  { %v918_v23 = vpop.f32.mrf.mxu0 }
 0x4ed   :  { %v919_v26 = vadd.f32 %v1167_v7, %v918_v23 }
 0x4ef   :  { %931 = vst [vmem:[#allocation10 + $0x28] sm:$0xff] %v919_v26 }
 0x545   :  { %v820_v28 = vpop.f32.mrf.mxu3 }
 0x549   :  { %v807_v54 = vpop.f32.mrf.mxu2 }
 0x54a   :  { %v808_v55 = vadd.f32 %v1586_v53, %v807_v54 }
 0x54c   :  { %v821_v29 = vadd.f32 %v820_v28, %v808_v55 }
 0x54d   :  { %v822_v56 = vpop.f32.mrf.mxu3 }
 0x54e   :  { %1198 = vtanh.f32 %v821_v29 }
 0x551   :  { %v809_v32 = vpop.f32.mrf.mxu2 }
 0x554   :  { %v1199_v34 = vpop.eup %1198 }
 0x555   :  { %v828_v57 = vpack.c.bf16 %v1199_v34, %v1195_v52 }
 0x557   :  { %920 = vmatmul.bf16.gmra.mxu0 %v828_v57 }
 0x5d4   :  { %v921_v58 = vpop.f32.mrf.mxu0 }
 0x5d5   :  { %v922_v21 = vadd.f32 %v1167_v7, %v921_v58 }
 0x5d7   :  { %932 = vst [vmem:[#allocation10 + $0x30] sm:$0xff] %v922_v21 }
 0x5dc   :  { %v923_v59 = vpop.f32.mrf.mxu0 }
 0x5dd   :  { %v924_v24 = vadd.f32 %v1167_v7, %v923_v59 }
 0x5df   :  { %933 = vst [vmem:[#allocation10 + $0x38] sm:$0xff] %v924_v24 }
 0x5e0   :  { %946 = dma.vmem_to_hbm [thread:$0]  %s939_s25, 1024, %s941_s28, [#allocation4], %s1332_s13, %s1332_s13, %s1333_s14  }
 0x5e1   :  { %1326 = dma.done.wait [#allocation4], 1024  }
 0x5e2   :  { %1327 = vsyncadd [#allocation4], 4294966272 }
 0x5e3   :  { %951 = vsyncpa [#allocation3], 1 }
 0x5e4   :  { %952 = vsyncpa [#allocation6], 1 }
 0x5e5   :  { %953 = vsyncpa [#allocation9], 1 }
 0x5e6   :  { %954 = vsyncpa [#allocation4], 1 }

</bundles_post_ra>
